<compile_context>
chip_gen: v5e
topology: v5e:2x2
jax: 0.10.0
libtpu: 0.0.40
codegen_flags: <defaults>
</compile_context>

<pallas_src>
import jax
import jax.numpy as jnp
from jax.experimental import pallas as pl
from jax.experimental.pallas import tpu as pltpu

# ----------------------- module hyper-params (synthetic) -----------------------
NUM_INPUTS    = 32
NUM_OUTPUTS   = 8            # A: number of categorical actions (MultiLinearLayer count)
HIDDEN_SIZES  = (32, 32)
PRE_BILINEAR  = 16           # P: pre_bilinear_size
BATCH         = 8

AP                = NUM_OUTPUTS * PRE_BILINEAR   # fused MLL width per stream (= 128)
MAX_TILE_B        = 2048                         # batch tile for the grid
SINGLE_TILE_MAX_B = 256                          # below this, keep a single tile


# ------------------------------- Pallas kernel ---------------------------------
def bilinear_categorical_kernel(x_ref, w1_ref, b1_ref, w2_ref, b2_ref,
                                wmll_ref, bmll_ref, sum_ref, logits_ref):
    f32 = jnp.float32
    mm_dtype = w1_ref.dtype   # matmul operand dtype (bf16 in deployment, f32 for checks)

    # Fused (block-diagonal) two-stream MLP: h = [relu(x1 W11+b11) | relu(x2 W21+b21)], ...
    h = jnp.maximum(
        jnp.dot(x_ref[...], w1_ref[...], preferred_element_type=f32) + b1_ref[...], 0.0)
    h = jnp.maximum(
        jnp.dot(h.astype(mm_dtype), w2_ref[...], preferred_element_type=f32) + b2_ref[...], 0.0)

    # Fused MultiLinearLayers: o = [o1 | o2], each half is [tb, A*P].
    o = jnp.dot(h.astype(mm_dtype), wmll_ref[...],
                preferred_element_type=f32) + bmll_ref[...]          # [tb, 2*A*P] f32
    o1 = o[:, :AP]          # lane-128 aligned split -> no relayout copy
    o2 = o[:, AP:]

    # Bilinear combine in f32: elementwise product, then per-action sum over P as a
    # block-diagonal 0/1 matmul on the MXU.  Output is stored slim ([tb, A]).
    prod = o1 * o2
    logits_ref[...] = jnp.dot(prod, sum_ref[...], preferred_element_type=f32)


# --------------------------------- wrapper --------------------------------------
def _round_up(x, m):
    return (x + m - 1) // m * m


def bilinear_categorical_forward(x1, x2, kernel_params):
    """x1, x2: [B, NUM_INPUTS] f32 -> logits [B, NUM_OUTPUTS] f32 (CustomFixedCategorical)."""
    (w1, b1, w2, b2, wmll, bmll, sum_mat) = kernel_params
    mm_dtype = w1.dtype

    # Fuse the two inputs into one lane-denser [B, 64] block (block-diagonal weights).
    x = jnp.concatenate([x1, x2], axis=1).astype(mm_dtype)
    B, F2 = x.shape

    B8 = _round_up(B, 8)
    tile_b = min(MAX_TILE_B, B8)
    if B8 > SINGLE_TILE_MAX_B:
        # v7x megacore: guarantee >= 2 grid steps so both TensorCores get work.
        tile_b = min(tile_b, _round_up(pl.cdiv(B8, 2), 8))
    B_pad = _round_up(B8, tile_b)
    if B_pad != B:
        x = jnp.pad(x, ((0, B_pad - B), (0, 0)))

    grid = (B_pad // tile_b,)
    weights = (w1, b1, w2, b2, wmll, bmll, sum_mat)

    def const_spec(arr):  # full array, resident across the batch grid
        return pl.BlockSpec(arr.shape, lambda i: (0, 0))

    H1, H2 = HIDDEN_SIZES
    flops = (2 * B_pad * (F2 * 2 * H1 + 2 * H1 * 2 * H2 + 2 * H2 * 2 * AP
                          + AP * NUM_OUTPUTS)
             + B_pad * (2 * H1 + 2 * H2 + 2 * AP + AP))        # bias/relu/product
    bytes_accessed = (int(x.nbytes)
                      + sum(int(w.nbytes) for w in weights)
                      + B_pad * NUM_OUTPUTS * 4)

    logits = pl.pallas_call(
        bilinear_categorical_kernel,
        out_shape=jax.ShapeDtypeStruct((B_pad, NUM_OUTPUTS), jnp.float32),
        grid=grid,
        in_specs=[pl.BlockSpec((tile_b, F2), lambda i: (i, 0))]
                 + [const_spec(w) for w in weights],
        out_specs=pl.BlockSpec((tile_b, NUM_OUTPUTS), lambda i: (i, 0)),
        compiler_params=pltpu.CompilerParams(
            dimension_semantics=("parallel",)),
        cost_estimate=pl.CostEstimate(
            flops=flops, transcendentals=0, bytes_accessed=bytes_accessed),
    )(x, *weights)

    return logits if B_pad == B else logits[:B]


# --------------------------- deterministic init ----------------------------------
def init_raw_params(key):
    """Per-layer parameters mirroring the PyTorch module structure."""
    keys = jax.random.split(key, 6)
    ortho = jax.nn.initializers.orthogonal(scale=jnp.sqrt(2.0))   # MLP.orthogonal_()
    H1, H2 = HIDDEN_SIZES

    w11 = ortho(keys[0], (NUM_INPUTS, H1), jnp.float32); b11 = jnp.zeros((1, H1), jnp.float32)
    w12 = ortho(keys[1], (H1, H2), jnp.float32);         b12 = jnp.zeros((1, H2), jnp.float32)
    w21 = ortho(keys[2], (NUM_INPUTS, H1), jnp.float32); b21 = jnp.zeros((1, H1), jnp.float32)
    w22 = ortho(keys[3], (H1, H2), jnp.float32);         b22 = jnp.zeros((1, H2), jnp.float32)

    # MultiLinearLayer: NUM_OUTPUTS independent Linear(H2 -> PRE_BILINEAR)
    def mll_init(k):
        kw, kb = jax.random.split(k)
        bound = 1.0 / jnp.sqrt(H2)
        w = jax.random.uniform(kw, (NUM_OUTPUTS, H2, PRE_BILINEAR), jnp.float32, -bound, bound)
        b = jax.random.uniform(kb, (NUM_OUTPUTS, PRE_BILINEAR), jnp.float32, -bound, bound)
        return w, b

    wm1, bm1 = mll_init(keys[4])
    wm2, bm2 = mll_init(keys[5])
    return (w11, b11, w12, b12, w21, b21, w22, b22, wm1, bm1, wm2, bm2)


def _block_diag(a, b):
    ra, ca = a.shape
    rb, cb = b.shape
    out = jnp.zeros((ra + rb, ca + cb), jnp.result_type(a.dtype, b.dtype))
    out = out.at[:ra, :ca].set(a)
    out = out.at[ra:, ca:].set(b)
    return out


def prepare_kernel_params(raw_params, matmul_dtype=jnp.bfloat16):
    """Fuse both streams into block-diagonal matmuls; cast matmul operands to bf16.

    Biases and the 0/1 sum matrix stay f32 (all elementwise math is done in f32)."""
    (w11, b11, w12, b12, w21, b21, w22, b22, wm1, bm1, wm2, bm2) = raw_params
    H1, H2 = HIDDEN_SIZES

    def fuse_mll(w, b):  # w: [A, H2, P], b: [A, P] -> [H2, A*P] (column a*P + p), [1, A*P]
        wf = jnp.transpose(w, (1, 0, 2)).reshape(H2, AP)
        bf = b.reshape(1, AP)
        return wf, bf

    wmll1, bmll1 = fuse_mll(wm1, bm1)
    wmll2, bmll2 = fuse_mll(wm2, bm2)

    w1   = _block_diag(w11, w21).astype(matmul_dtype)       # [2*NI, 2*H1]
    w2   = _block_diag(w12, w22).astype(matmul_dtype)       # [2*H1, 2*H2]
    wmll = _block_diag(wmll1, wmll2).astype(matmul_dtype)   # [2*H2, 2*A*P]
    b1   = jnp.concatenate([b11, b21], axis=1)              # [1, 2*H1]  f32
    b2   = jnp.concatenate([b12, b22], axis=1)              # [1, 2*H2]  f32
    bmll = jnp.concatenate([bmll1, bmll2], axis=1)          # [1, 2*A*P] f32

    # Per-action sum over P: S[a*P+p, a] = 1  (slim [A*P, A] output -> slim store).
    rows = jnp.arange(AP) // PRE_BILINEAR
    cols = jnp.arange(NUM_OUTPUTS)
    sum_mat = (rows[:, None] == cols[None, :]).astype(jnp.float32)

    return (w1, b1, w2, b2, wmll, bmll, sum_mat)


# ------------------------------ reference (pure JAX) -----------------------------
def reference_forward(x1, x2, raw_params, matmul_dtype=jnp.float32):
    """Straightforward per-layer reference; matmul_dtype lets us match the bf16 path."""
    (w11, b11, w12, b12, w21, b21, w22, b22, wm1, bm1, wm2, bm2) = raw_params
    f32 = jnp.float32

    def lin(x, w, b):
        return jnp.dot(x.astype(matmul_dtype), w.astype(matmul_dtype),
                       preferred_element_type=f32) + b

    h1 = jnp.maximum(lin(x1, w11, b11), 0.0)
    h1 = jnp.maximum(lin(h1, w12, b12), 0.0)
    h2 = jnp.maximum(lin(x2, w21, b21), 0.0)
    h2 = jnp.maximum(lin(h2, w22, b22), 0.0)
    # MultiLinearLayer: stack per-action outputs along dim=-1 -> [B, P, A]
    o1 = jnp.stack([lin(h1, wm1[a], bm1[a]) for a in range(NUM_OUTPUTS)], axis=-1)
    o2 = jnp.stack([lin(h2, wm2[a], bm2[a]) for a in range(NUM_OUTPUTS)], axis=-1)
    return jnp.sum(o1 * o2, axis=-2)                           # logits [B, A]


if __name__ == "__main__":
    key = jax.random.PRNGKey(0)
    kx1, kx2, kp = jax.random.split(key, 3)

    x1 = jax.random.normal(kx1, (BATCH, NUM_INPUTS), jnp.float32)
    x2 = jax.random.normal(kx2, (BATCH, NUM_INPUTS), jnp.float32)

    raw_params = init_raw_params(kp)

    # --- f32 matmul path: exact-semantics check against the PyTorch-equivalent ref ---
    params_f32 = prepare_kernel_params(raw_params, matmul_dtype=jnp.float32)
    logits_f32 = bilinear_categorical_forward(x1, x2, params_f32)
    jax.block_until_ready(logits_f32)
    ref_f32 = reference_forward(x1, x2, raw_params, matmul_dtype=jnp.float32)
    assert logits_f32.shape == (BATCH, NUM_OUTPUTS)
    assert jnp.allclose(logits_f32, ref_f32, atol=1e-4, rtol=1e-4)

    # --- bf16 matmul-operand path (deployment default): matched-precision check ---
    params_bf16 = prepare_kernel_params(raw_params, matmul_dtype=jnp.bfloat16)
    logits_bf16 = bilinear_categorical_forward(x1, x2, params_bf16)
    jax.block_until_ready(logits_bf16)
    ref_bf16 = reference_forward(x1, x2, raw_params, matmul_dtype=jnp.bfloat16)
    assert logits_bf16.shape == (BATCH, NUM_OUTPUTS)
    assert jnp.allclose(logits_bf16, ref_bf16, atol=5e-3, rtol=5e-3)
    assert jnp.allclose(logits_bf16, ref_f32, atol=2e-1, rtol=1e-1)   # sanity vs full precision

    # TODO(synk): CustomFixedCategorical (sampling / log_prob) is a distribution
    # object in PyTorch; we return its defining logits.
    print("KERNEL_OK")
</pallas_src>

<mosaic_0001>
module attributes {stable_mosaic.version = 11 : i64} {
  func.func @bilinear_categorical_kernel(%arg0: i32, %arg1: memref<8x64xf32, #tpu.memory_space<vmem>>, %arg2: memref<64x64xf32, #tpu.memory_space<vmem>>, %arg3: memref<1x64xf32, #tpu.memory_space<vmem>>, %arg4: memref<64x64xf32, #tpu.memory_space<vmem>>, %arg5: memref<1x64xf32, #tpu.memory_space<vmem>>, %arg6: memref<64x256xf32, #tpu.memory_space<vmem>>, %arg7: memref<1x256xf32, #tpu.memory_space<vmem>>, %arg8: memref<128x8xf32, #tpu.memory_space<vmem>>, %arg9: memref<8x8xf32, #tpu.memory_space<vmem>>) attributes {dimension_semantics = [#tpu.dimension_semantics<parallel>], iteration_bounds = array<i64: 1>, scalar_prefetch = 0 : i64, scratch_operands = 0 : i64, tpu.core_type = #tpu.core_type<tc>, window_params = [{transform_indices = @transform_0, window_bounds = array<i64: 8, 64>}, {pipeline_mode = #tpu.pipeline_mode<synchronous>, transform_indices = @transform_1, window_bounds = array<i64: 64, 64>}, {pipeline_mode = #tpu.pipeline_mode<synchronous>, transform_indices = @transform_2, window_bounds = array<i64: 1, 64>}, {pipeline_mode = #tpu.pipeline_mode<synchronous>, transform_indices = @transform_3, window_bounds = array<i64: 64, 64>}, {pipeline_mode = #tpu.pipeline_mode<synchronous>, transform_indices = @transform_4, window_bounds = array<i64: 1, 64>}, {pipeline_mode = #tpu.pipeline_mode<synchronous>, transform_indices = @transform_5, window_bounds = array<i64: 64, 256>}, {pipeline_mode = #tpu.pipeline_mode<synchronous>, transform_indices = @transform_6, window_bounds = array<i64: 1, 256>}, {pipeline_mode = #tpu.pipeline_mode<synchronous>, transform_indices = @transform_7, window_bounds = array<i64: 128, 8>}, {transform_indices = @transform_8, window_bounds = array<i64: 8, 8>}]} {
    %c0 = arith.constant 0 : index
    %c0_0 = arith.constant 0 : index
    %0 = vector.load %arg1[%c0, %c0_0] : memref<8x64xf32, #tpu.memory_space<vmem>>, vector<8x64xf32>
    %c0_1 = arith.constant 0 : index
    %c0_2 = arith.constant 0 : index
    %1 = vector.load %arg2[%c0_1, %c0_2] : memref<64x64xf32, #tpu.memory_space<vmem>>, vector<64x64xf32>
    %cst = arith.constant dense<0.000000e+00> : vector<8x64xf32>
    %2 = tpu.matmul %0, %1, %cst {dimension_numbers = #tpu.dot_dimension_numbers<[1], [0], [0], [1], [0, 0, 1, 1], [], []>} : vector<8x64xf32>, vector<64x64xf32>, vector<8x64xf32> -> vector<8x64xf32>
    %c0_3 = arith.constant 0 : index
    %c0_4 = arith.constant 0 : index
    %3 = vector.load %arg3[%c0_3, %c0_4] : memref<1x64xf32, #tpu.memory_space<vmem>>, vector<1x64xf32>
    %4 = vector.broadcast %3 : vector<1x64xf32> to vector<8x64xf32>
    %5 = arith.addf %2, %4 : vector<8x64xf32>
    %cst_5 = arith.constant 0.000000e+00 : f32
    %6 = vector.broadcast %cst_5 : f32 to vector<8x64xf32>
    %7 = arith.maximumf %5, %6 : vector<8x64xf32>
    %c0_6 = arith.constant 0 : index
    %c0_7 = arith.constant 0 : index
    %8 = vector.load %arg4[%c0_6, %c0_7] : memref<64x64xf32, #tpu.memory_space<vmem>>, vector<64x64xf32>
    %cst_8 = arith.constant dense<0.000000e+00> : vector<8x64xf32>
    %9 = tpu.matmul %7, %8, %cst_8 {dimension_numbers = #tpu.dot_dimension_numbers<[1], [0], [0], [1], [0, 0, 1, 1], [], []>} : vector<8x64xf32>, vector<64x64xf32>, vector<8x64xf32> -> vector<8x64xf32>
    %c0_9 = arith.constant 0 : index
    %c0_10 = arith.constant 0 : index
    %10 = vector.load %arg5[%c0_9, %c0_10] : memref<1x64xf32, #tpu.memory_space<vmem>>, vector<1x64xf32>
    %11 = vector.broadcast %10 : vector<1x64xf32> to vector<8x64xf32>
    %12 = arith.addf %9, %11 : vector<8x64xf32>
    %cst_11 = arith.constant 0.000000e+00 : f32
    %13 = vector.broadcast %cst_11 : f32 to vector<8x64xf32>
    %14 = arith.maximumf %12, %13 : vector<8x64xf32>
    %c0_12 = arith.constant 0 : index
    %c0_13 = arith.constant 0 : index
    %15 = vector.load %arg6[%c0_12, %c0_13] : memref<64x256xf32, #tpu.memory_space<vmem>>, vector<64x256xf32>
    %cst_14 = arith.constant dense<0.000000e+00> : vector<8x256xf32>
    %16 = tpu.matmul %14, %15, %cst_14 {dimension_numbers = #tpu.dot_dimension_numbers<[1], [0], [0], [1], [0, 0, 1, 1], [], []>} : vector<8x64xf32>, vector<64x256xf32>, vector<8x256xf32> -> vector<8x256xf32>
    %c0_15 = arith.constant 0 : index
    %c0_16 = arith.constant 0 : index
    %17 = vector.load %arg7[%c0_15, %c0_16] : memref<1x256xf32, #tpu.memory_space<vmem>>, vector<1x256xf32>
    %18 = vector.broadcast %17 : vector<1x256xf32> to vector<8x256xf32>
    %19 = arith.addf %16, %18 : vector<8x256xf32>
    %20 = vector.extract_strided_slice %19 {offsets = [0, 0], sizes = [8, 128], strides = [1, 1]} : vector<8x256xf32> to vector<8x128xf32>
    %21 = vector.extract_strided_slice %19 {offsets = [0, 128], sizes = [8, 128], strides = [1, 1]} : vector<8x256xf32> to vector<8x128xf32>
    %22 = arith.mulf %20, %21 : vector<8x128xf32>
    %c0_17 = arith.constant 0 : index
    %c0_18 = arith.constant 0 : index
    %23 = vector.load %arg8[%c0_17, %c0_18] : memref<128x8xf32, #tpu.memory_space<vmem>>, vector<128x8xf32>
    %cst_19 = arith.constant dense<0.000000e+00> : vector<8x8xf32>
    %24 = tpu.matmul %22, %23, %cst_19 {dimension_numbers = #tpu.dot_dimension_numbers<[1], [0], [0], [1], [0, 0, 1, 1], [], []>} : vector<8x128xf32>, vector<128x8xf32>, vector<8x8xf32> -> vector<8x8xf32>
    %c0_20 = arith.constant 0 : index
    %c0_21 = arith.constant 0 : index
    %25 = vector.load %arg9[%c0_20, %c0_21] : memref<8x8xf32, #tpu.memory_space<vmem>>, vector<8x8xf32>
    tpu.vector_store %arg9[%c0_20, %c0_21], %24 {strides = array<i32>} : memref<8x8xf32, #tpu.memory_space<vmem>>, vector<8x8xf32>,
    return
  }
  func.func @transform_0(%arg0: i32) -> (i32, i32) {
    %c0_i32 = arith.constant 0 : i32
    %c0_i32_0 = arith.constant 0 : i32
    return %arg0, %c0_i32 : i32, i32
  }
  func.func @transform_1(%arg0: i32) -> (i32, i32) {
    %c0_i32 = arith.constant 0 : i32
    %c0_i32_0 = arith.constant 0 : i32
    %c0_i32_1 = arith.constant 0 : i32
    return %c0_i32, %c0_i32_0 : i32, i32
  }
  func.func @transform_2(%arg0: i32) -> (i32, i32) {
    %c0_i32 = arith.constant 0 : i32
    %c0_i32_0 = arith.constant 0 : i32
    %c0_i32_1 = arith.constant 0 : i32
    return %c0_i32, %c0_i32_0 : i32, i32
  }
  func.func @transform_3(%arg0: i32) -> (i32, i32) {
    %c0_i32 = arith.constant 0 : i32
    %c0_i32_0 = arith.constant 0 : i32
    %c0_i32_1 = arith.constant 0 : i32
    return %c0_i32, %c0_i32_0 : i32, i32
  }
  func.func @transform_4(%arg0: i32) -> (i32, i32) {
    %c0_i32 = arith.constant 0 : i32
    %c0_i32_0 = arith.constant 0 : i32
    %c0_i32_1 = arith.constant 0 : i32
    return %c0_i32, %c0_i32_0 : i32, i32
  }
  func.func @transform_5(%arg0: i32) -> (i32, i32) {
    %c0_i32 = arith.constant 0 : i32
    %c0_i32_0 = arith.constant 0 : i32
    %c0_i32_1 = arith.constant 0 : i32
    return %c0_i32, %c0_i32_0 : i32, i32
  }
  func.func @transform_6(%arg0: i32) -> (i32, i32) {
    %c0_i32 = arith.constant 0 : i32
    %c0_i32_0 = arith.constant 0 : i32
    %c0_i32_1 = arith.constant 0 : i32
    return %c0_i32, %c0_i32_0 : i32, i32
  }
  func.func @transform_7(%arg0: i32) -> (i32, i32) {
    %c0_i32 = arith.constant 0 : i32
    %c0_i32_0 = arith.constant 0 : i32
    %c0_i32_1 = arith.constant 0 : i32
    return %c0_i32, %c0_i32_0 : i32, i32
  }
  func.func @transform_8(%arg0: i32) -> (i32, i32) {
    %c0_i32 = arith.constant 0 : i32
    %c0_i32_0 = arith.constant 0 : i32
    return %arg0, %c0_i32 : i32, i32
  }
}

</mosaic_0001>

<bundles_post_ra>
// kernel: tpu_custom_call.1
= control target key start
LH: loop header
LB: loop body
LE: loop exit
PB: predicated region body
PF: predicated region fallthrough
CT: control target
= control target key end

     0   :  { %13 = vsyncpa [#allocation3], 0  ;;  %s518_s0 = inlined_call_operand.vmem [shape: f32[8,64], index: 0, kind: input, shape index: {}]   ;;  %s519_s1 = inlined_call_operand.hbm [shape: f32[64,64], index: 1, kind: input, shape index: {}]   ;;  %s520_s2 = inlined_call_operand.vmem [shape: f32[1,64], index: 2, kind: input, shape index: {}]   ;;  %s521_s3 = inlined_call_operand.hbm [shape: f32[64,64], index: 3, kind: input, shape index: {}]   ;;  %s522_s4 = inlined_call_operand.vmem [shape: f32[1,64], index: 4, kind: input, shape index: {}]   ;;  %s523_s5 = inlined_call_operand.vmem [shape: f32[64,256], index: 5, kind: input, shape index: {}]   ;;  %s524_s6 = inlined_call_operand.vmem [shape: f32[1,256], index: 6, kind: input, shape index: {}]   ;;  %s525_s7 = inlined_call_operand.vmem [shape: f32[128,8], index: 7, kind: input, shape index: {}]   ;;  %s526_s8 = inlined_call_operand.hbm [shape: f32[8,8], index: 8, kind: output, shape index: {}]  }
   0x1   :  { %14 = vsyncpa [#allocation6], 0 }
   0x2   :  { %15 = vsyncpa [#allocation4], 0  ;;  %s22_s29 = sshll.u32 %s519_s1, 4  ;;  %s347_s30 = smov [#allocation2]   ;;  %s23_s29 = int_to_ptr.hbm [resolvable:$true] %s22_s29 }
   0x3   :  { %s24_s9 = sshll.u32 %s347_s30, 4  ;;  %s37_s12 = sshll.u32 %s521_s3, 4  ;;  %s25_s9 = int_to_ptr.vmem [resolvable:$true] %s24_s9  ;;  %s38_s12 = int_to_ptr.hbm [resolvable:$true] %s37_s12 }
   0x4   :  { %s348_s13 = smov 128   ;;  %s349_s14 = smov 8  }
   0x5   :  { %30 = dma.hbm_to_vmem [thread:$0]  %s23_s29, 1024, %s25_s9, [#allocation3], %s348_s13, %s348_s13, %s349_s14  }
   0x6   :  { %s350_s15 = smov [#allocation5]  }
   0x7   :  { %s39_s16 = sshll.u32 %s350_s15, 4  ;;  %s40_s16 = int_to_ptr.vmem [resolvable:$true] %s39_s16 }
   0x8   :  { %45 = dma.hbm_to_vmem [thread:$0]  %s38_s12, 1024, %s40_s16, [#allocation6], %s348_s13, %s348_s13, %s349_s14  }
   0x9   :  { %341 = dma.done.wait [#allocation3], 1024  }
   0xa   :  { %342 = vsyncadd [#allocation3], 4294966272 }
   0xb   :  { %343 = dma.done.wait [#allocation6], 1024  }
   0xc   :  { %344 = vsyncadd [#allocation6], 4294966272  ;;  %v70_v0 = vld [vmem:[#allocation2 + $0x38] sm:$0xff]  ;;  %v69_v1 = vld [vmem:[#allocation2 + $0x30] sm:$0xff]  ;;  %vm75_vm0 = vcmask 523264   ;;  %vm238_vm1 = vcmask 64512  }
   0xd   :  { %87 = vmatpush.msra.mxu1 %v70_v0  ;;  %v68_v2 = vld [vmem:[#allocation2 + $0x28] sm:$0xff]  ;;  %v67_v3 = vld [vmem:[#allocation2 + $0x20] sm:$0xff]  ;;  %v66_v4 = vld [vmem:[#allocation2 + $0x18] sm:$0xff] }
   0xe   :  { %v65_v5 = vld [vmem:[#allocation2 + $0x10] sm:$0xff]  ;;  %v64_v6 = vld [vmem:[#allocation2 + $0x8] sm:$0xff]  ;;  %v63_v7 = vld [vmem:[#allocation2] sm:$0xff] }
   0xf   :  { %88 = vmatpush.msra.mxu1 %v69_v1  ;;  %v62_v8 = vld [vmem:[%s518_s0] sm:$0xff]  ;;  %v107_v9 = vld [vmem:[#allocation5 + $0x38] sm:$0xff]  ;;  %v106_v10 = vld [vmem:[#allocation5 + $0x30] sm:$0xff] }
  0x10   :  { %v105_v11 = vld [vmem:[#allocation5 + $0x28] sm:$0xff]  ;;  %v104_v12 = vld [vmem:[#allocation5 + $0x20] sm:$0xff]  ;;  %v103_v13 = vld [vmem:[#allocation5 + $0x18] sm:$0xff] }
  0x11   :  { %89 = vmatpush.msra.mxu1 %v68_v2  ;;  %v102_v14 = vld [vmem:[#allocation5 + $0x10] sm:$0xff]  ;;  %v101_v15 = vld [vmem:[#allocation5 + $0x8] sm:$0xff]  ;;  %v100_v16 = vld [vmem:[#allocation5] sm:$0xff] }
  0x12   :  { %v150_v17 = vld [vmem:[%s523_s5 + $0x70] sm:$0xff]  ;;  %v151_v18 = vld [vmem:[%s523_s5 + $0x78] sm:$0xff]  ;;  %v148_v19 = vld [vmem:[%s523_s5 + $0x60] sm:$0xff] }
  0x13   :  { %90 = vmatpush.msra.mxu1 %v67_v3  ;;  %169 = vmatpush.msra.mxu2 %v150_v17  ;;  %v149_v20 = vld [vmem:[%s523_s5 + $0x68] sm:$0xff]  ;;  %v146_v21 = vld [vmem:[%s523_s5 + $0x50] sm:$0xff]  ;;  %v147_v22 = vld [vmem:[%s523_s5 + $0x58] sm:$0xff] }
  0x14   :  { %189 = vmatpush.msra.mxu3 %v151_v18  ;;  %v144_v23 = vld [vmem:[%s523_s5 + $0x40] sm:$0xff]  ;;  %v145_v24 = vld [vmem:[%s523_s5 + $0x48] sm:$0xff]  ;;  %v142_v25 = vld [vmem:[%s523_s5 + $0x30] sm:$0xff] }
  0x15   :  { %91 = vmatpush.msra.mxu1 %v66_v4  ;;  %170 = vmatpush.msra.mxu2 %v148_v19  ;;  %v143_v26 = vld [vmem:[%s523_s5 + $0x38] sm:$0xff]  ;;  %v267_v27 = vld [vmem:[%s520_s2] ss:$0 sm:$0xff]  ;;  %v141_v32 = vld [vmem:[%s523_s5 + $0x28] sm:$0xff] }
  0x16   :  { %190 = vmatpush.msra.mxu3 %v149_v20  ;;  %v140_v31 = vld [vmem:[%s523_s5 + $0x20] sm:$0xff]  ;;  %v138_v33 = vld [vmem:[%s523_s5 + $0x10] sm:$0xff]  ;;  %v139_v34 = vld [vmem:[%s523_s5 + $0x18] sm:$0xff] }
  0x17   :  { %92 = vmatpush.msra.mxu1 %v65_v5  ;;  %171 = vmatpush.msra.mxu2 %v146_v21  ;;  %v136_v35 = vld [vmem:[%s523_s5] sm:$0xff]  ;;  %v137_v36 = vld [vmem:[%s523_s5 + $0x8] sm:$0xff]  ;;  %v217_v37 = vld [vmem:[%s525_s7 + $0x78] sm:$0xff]  ;;  %s351_s5 = smov [#allocation7]  }
  0x18   :  { %191 = vmatpush.msra.mxu3 %v147_v22  ;;  %v216_v38 = vld [vmem:[%s525_s7 + $0x70] sm:$0xff]  ;;  %218 = vmatpush.msra.mxu0 %v217_v37  ;;  %v215_v39 = vld [vmem:[%s525_s7 + $0x68] sm:$0xff]  ;;  %v214_v40 = vld [vmem:[%s525_s7 + $0x60] sm:$0xff]  ;;  %s245_s10 = sshll.u32 %s351_s5, 4  ;;  %s246_s10 = int_to_ptr.vmem [resolvable:$true] %s245_s10 }
  0x19   :  { %93 = vmatpush.msra.mxu1 %v64_v6  ;;  %172 = vmatpush.msra.mxu2 %v144_v23  ;;  %v213_v41 = vld [vmem:[%s525_s7 + $0x58] sm:$0xff]  ;;  %v212_v42 = vld [vmem:[%s525_s7 + $0x50] sm:$0xff]  ;;  %v211_v43 = vld [vmem:[%s525_s7 + $0x48] sm:$0xff] }
  0x1a   :  { %192 = vmatpush.msra.mxu3 %v145_v24  ;;  %219 = vmatpush.msra.mxu0 %v216_v38  ;;  %v210_v44 = vld [vmem:[%s525_s7 + $0x40] sm:$0xff]  ;;  %v209_v45 = vld [vmem:[%s525_s7 + $0x38] sm:$0xff]  ;;  %v208_v46 = vld [vmem:[%s525_s7 + $0x30] sm:$0xff] }
  0x1b   :  { %94 = vmatpush.msra.mxu1 %v63_v7  ;;  %173 = vmatpush.msra.mxu2 %v142_v25  ;;  %v207_v47 = vld [vmem:[%s525_s7 + $0x28] sm:$0xff]  ;;  %v206_v48 = vld [vmem:[%s525_s7 + $0x20] sm:$0xff]  ;;  %v205_v49 = vld [vmem:[%s525_s7 + $0x18] sm:$0xff] }
  0x1c   :  { %258 = vmatmul.msk.f32.vlgmr.msra.gmra.mxu1 %vm75_vm0, %v62_v8  ;;  %193 = vmatpush.msra.mxu3 %v143_v26  ;;  %v268_v50 = vld [vmem:[%s522_s4] ss:$0 sm:$0xff]  ;;  %v204_v54 = vld [vmem:[%s525_s7 + $0x10] sm:$0xff]  ;;  %v203_v55 = vld [vmem:[%s525_s7 + $0x8] sm:$0xff] }
  0x1d   :  { %123 = vmatpush.msrb.mxu1 %v107_v9  ;;  %174 = vmatpush.msra.mxu2 %v140_v31  ;;  %v202_v56 = vld [vmem:[%s525_s7] sm:$0xff]  ;;  %s247_s7 = sshll.u32 %s526_s8, 4  ;;  %s248_s7 = int_to_ptr.hbm [resolvable:$true] %s247_s7 }
  0x1e   :  { %194 = vmatpush.msra.mxu3 %v141_v32  ;;  %220 = vmatpush.msra.mxu0 %v215_v39  ;;  %v152_v57 = vld [vmem:[%s524_s6] sm:$0x3] }
  0x1f   :  { %124 = vmatpush.msrb.mxu1 %v106_v10  ;;  %175 = vmatpush.msra.mxu2 %v138_v33  ;;  %v154_v58 = vperm.slane %v152_v57, 0  ;;  %v155_v59 = vperm.slane %v152_v57, 1 }
  0x20   :  { %195 = vmatpush.msra.mxu3 %v139_v34  ;;  %221 = vmatpush.msra.mxu0 %v214_v40 }
  0x21   :  { %125 = vmatpush.msrb.mxu1 %v105_v11  ;;  %176 = vmatpush.msra.mxu2 %v136_v35 }
  0x22   :  { %196 = vmatpush.msra.mxu3 %v137_v36  ;;  %222 = vmatpush.msra.mxu0 %v213_v41 }
  0x23   :  { %126 = vmatpush.msrb.mxu1 %v104_v12 }
  0x24   :  { %223 = vmatpush.msra.mxu0 %v212_v42 }
  0x25   :  { %127 = vmatpush.msrb.mxu1 %v103_v13 }
  0x26   :  { %224 = vmatpush.msra.mxu0 %v211_v43 }
  0x27   :  { %128 = vmatpush.msrb.mxu1 %v102_v14 }
  0x28   :  { %225 = vmatpush.msra.mxu0 %v210_v44 }
  0x29   :  { %129 = vmatpush.msrb.mxu1 %v101_v15 }
  0x2a   :  { %226 = vmatpush.msra.mxu0 %v209_v45 }
  0x2b   :  { %130 = vmatpush.msrb.mxu1 %v100_v16 }
  0x2c   :  { %227 = vmatpush.msra.mxu0 %v208_v46 }
  0x2e   :  { %228 = vmatpush.msra.mxu0 %v207_v47 }
  0x30   :  { %229 = vmatpush.msra.mxu0 %v206_v48 }
  0x32   :  { %230 = vmatpush.msra.mxu0 %v205_v49 }
  0x34   :  { %231 = vmatpush.msra.mxu0 %v204_v54 }
  0x36   :  { %232 = vmatpush.msra.mxu0 %v203_v55 }
  0x38   :  { %233 = vmatpush.msra.mxu0 %v202_v56 }
  0x99   :  { %v96_v28 = vpop.f32.mrf.mxu1 }
  0x9a   :  { %v97_v29 = vadd.f32 %v267_v27, %v96_v28 }
  0x9c   :  { %v99_v30 = vmax.f32 %v97_v29, 0.0 }
  0x9e   :  { %259 = vmatmul.msk.f32.vlgmr.msrb.gmra.mxu1 %vm75_vm0, %v99_v30 }
 0x11b   :  { %v132_v51 = vpop.f32.mrf.mxu1 }
 0x11c   :  { %v133_v52 = vadd.f32 %v268_v50, %v132_v51 }
 0x11e   :  { %v135_v53 = vmax.f32 %v133_v52, 0.0 }
 0x120   :  { %260 = vmatmul.msk.f32.vlgmr.msra.gmra.mxu2 %vm75_vm0, %v135_v53  ;;  %261 = vmatmul.msk.f32.vlgmr.msra.gmra.mxu3 %vm75_vm0, %v135_v53 }
 0x1a3   :  { %v178_v60 = vpop.f32.mrf.mxu2  ;;  %v198_v61 = vpop.f32.mrf.mxu3 }
 0x1a4   :  { %v179_v62 = vadd.f32 %v178_v60, %v154_v58  ;;  %v199_v63 = vadd.f32 %v198_v61, %v155_v59 }
 0x1a6   :  { %v201_v0 = vmul.f32 %v199_v63, %v179_v62 }
 0x1a8   :  { %234 = vmatmul.f32.vlgmr.msra.gmra.mxu0 %v201_v0 }
 0x225   :  { %v235_v1 = vpop.f32.mrf.mxu0 }
 0x226   :  { %239 = vst.msk [vmem:[#allocation7] sm:$0xff] %vm238_vm1, %v235_v1 }
 0x227   :  { %250 = dma.vmem_to_hbm [thread:$0]  %s246_s10, 128, %s248_s7, [#allocation4]  }
 0x228   :  { %345 = dma.done.wait [#allocation4], 128  }
 0x229   :  { %346 = vsyncadd [#allocation4], 4294967168 }
 0x22a   :  { %255 = vsyncpa [#allocation3], 1 }
 0x22b   :  { %256 = vsyncpa [#allocation6], 1 }
 0x22c   :  { %257 = vsyncpa [#allocation4], 1 }

</bundles_post_ra>
